<compile_context>
chip_gen: v7x
topology: tpu7x:2x2x1
jax: 0.10.0
libtpu: 0.0.40
codegen_flags: <defaults>
</compile_context>

<pallas_src>
import functools

import jax
import jax.numpy as jnp
from jax.experimental import pallas as pl
from jax.experimental.pallas import tpu as pltpu

D_IN, D_HIDDEN, D_OUT = 96, 192, 48
D_OUT_PAD = 128  # lane-dense output width (multiple of 128)


def mlp_kernel(x_ref, w1_ref, b1_ref, w2_ref, b2_ref, o_ref):
    # fc1: (TB, 96)bf16 @ (96, 192)bf16 -> f32 accumulate on the MXU
    h = jnp.dot(x_ref[...], w1_ref[...], preferred_element_type=jnp.float32)
    # bias add + ReLU in f32 (v5e has no bf16 VPU path)
    h = jnp.maximum(h + b1_ref[...], 0.0)
    # fc4 (output padded to 128 lanes): (TB, 192)bf16 @ (192, 128)bf16 -> f32
    out = jnp.dot(h.astype(w2_ref.dtype), w2_ref[...],
                  preferred_element_type=jnp.float32)
    out = out + b2_ref[...]
    o_ref[...] = out.astype(o_ref.dtype)


@functools.partial(jax.jit, static_argnames=("tb",))
def mlp_forward(x, w1, b1, w2, b2, *, tb=1024):
    """x: (B, 96) f32; w1: (192, 96); b1: (192,); w2: (48, 192); b2: (48,).
    Returns (B, 48) f32, matching torch: fc4(relu(fc1(x)))."""
    B = x.shape[0]
    assert x.shape == (B, D_IN)

    # Batch tile: multiple of 8 (sublane), capped so tiny batches are not over-padded.
    TB = min(tb, max(8, ((B + 7) // 8) * 8))
    Bp = ((B + TB - 1) // TB) * TB
    num_tiles = Bp // TB

    x_p = x if Bp == B else jnp.pad(x, ((0, Bp - B), (0, 0)))

    # bf16 operands for the MXU; biases stay f32 for the VPU add.
    cdt = jnp.bfloat16
    x_c = x_p.astype(cdt)
    w1_t = w1.T.astype(cdt)                                   # (96, 192)
    w2_t = jnp.zeros((D_HIDDEN, D_OUT_PAD), cdt).at[:, :D_OUT].set(
        w2.T.astype(cdt))                                     # (192, 128), zero-padded
    b1_r = b1.reshape(1, D_HIDDEN).astype(jnp.float32)
    b2_r = jnp.zeros((1, D_OUT_PAD), jnp.float32).at[:, :D_OUT].set(
        b2.astype(jnp.float32))

    flops = 2 * Bp * (D_IN * D_HIDDEN + D_HIDDEN * D_OUT_PAD)
    bytes_accessed = (x_c.size * 2 + w1_t.size * 2 + w2_t.size * 2
                      + b1_r.size * 4 + b2_r.size * 4 + Bp * D_OUT_PAD * 4)

    out_padded = pl.pallas_call(
        mlp_kernel,
        out_shape=jax.ShapeDtypeStruct((Bp, D_OUT_PAD), jnp.float32),
        grid_spec=pltpu.PrefetchScalarGridSpec(
            num_scalar_prefetch=0,
            grid=(num_tiles,),
            in_specs=[
                pl.BlockSpec((TB, D_IN), lambda i: (i, 0)),            # x: per-tile
                pl.BlockSpec((D_IN, D_HIDDEN), lambda i: (0, 0)),      # w1: resident
                pl.BlockSpec((1, D_HIDDEN), lambda i: (0, 0)),         # b1: resident
                pl.BlockSpec((D_HIDDEN, D_OUT_PAD), lambda i: (0, 0)),  # w2: resident
                pl.BlockSpec((1, D_OUT_PAD), lambda i: (0, 0)),        # b2: resident
            ],
            out_specs=pl.BlockSpec((TB, D_OUT_PAD), lambda i: (i, 0)),
        ),
        compiler_params=pltpu.CompilerParams(
            dimension_semantics=("parallel",)),
        cost_estimate=pl.CostEstimate(
            flops=flops, transcendentals=0, bytes_accessed=bytes_accessed),
    )(x_c, w1_t, b1_r, w2_t, b2_r)

    # Slice away batch padding and the lane padding (48 real output features).
    return out_padded[:B, :D_OUT]


def init_params(key):
    """Deterministic init matching PyTorch nn.Linear default:
    U(-1/sqrt(fan_in), 1/sqrt(fan_in)) for weight and bias."""
    k1, k2, k3, k4 = jax.random.split(key, 4)
    bound1 = 1.0 / jnp.sqrt(96.0)
    bound2 = 1.0 / jnp.sqrt(192.0)
    w1 = jax.random.uniform(k1, (D_HIDDEN, D_IN), jnp.float32, -bound1, bound1)
    b1 = jax.random.uniform(k2, (D_HIDDEN,), jnp.float32, -bound1, bound1)
    w2 = jax.random.uniform(k3, (D_OUT, D_HIDDEN), jnp.float32, -bound2, bound2)
    b2 = jax.random.uniform(k4, (D_OUT,), jnp.float32, -bound2, bound2)
    return w1, b1, w2, b2


if __name__ == "__main__":
    key = jax.random.PRNGKey(0)
    k_params, k_x = jax.random.split(key)

    w1, b1, w2, b2 = init_params(k_params)
    B = 8
    x = jax.random.normal(k_x, (B, D_IN), jnp.float32)

    out = mlp_forward(x, w1, b1, w2, b2)
    out = jax.block_until_ready(out)
    assert out.shape == (B, D_OUT)

    # Matched-precision reference (same bf16 operands, f32 accumulate).
    x_bf = x.astype(jnp.bfloat16)
    w1_bf = w1.T.astype(jnp.bfloat16)
    w2_bf = w2.T.astype(jnp.bfloat16)
    h_ref = jnp.maximum(
        jnp.dot(x_bf, w1_bf, preferred_element_type=jnp.float32) + b1, 0.0)
    ref = jnp.dot(h_ref.astype(jnp.bfloat16), w2_bf,
                  preferred_element_type=jnp.float32) + b2
    assert jnp.allclose(out, ref, atol=2e-3, rtol=2e-3)

    # Loose check against the pure-f32 PyTorch-semantics reference.
    ref_f32 = jnp.maximum(x @ w1.T + b1, 0.0) @ w2.T + b2
    assert jnp.allclose(out, ref_f32, atol=5e-2, rtol=5e-2)

    print("KERNEL_OK")
</pallas_src>

<mosaic_0001>
module attributes {stable_mosaic.version = 11 : i64} {
  func.func @mlp_kernel(%arg0: i32, %arg1: memref<8x96xbf16, #tpu.memory_space<vmem>>, %arg2: memref<96x192xbf16, #tpu.memory_space<vmem>>, %arg3: memref<1x192xf32, #tpu.memory_space<vmem>>, %arg4: memref<192x128xbf16, #tpu.memory_space<vmem>>, %arg5: memref<1x128xf32, #tpu.memory_space<vmem>>, %arg6: memref<8x128xf32, #tpu.memory_space<vmem>>) attributes {dimension_semantics = [#tpu.dimension_semantics<parallel>], iteration_bounds = array<i64: 1>, scalar_prefetch = 0 : i64, scratch_operands = 0 : i64, tpu.core_type = #tpu.core_type<tc>, window_params = [{transform_indices = @transform_0, window_bounds = array<i64: 8, 96>}, {pipeline_mode = #tpu.pipeline_mode<synchronous>, transform_indices = @transform_1, window_bounds = array<i64: 96, 192>}, {pipeline_mode = #tpu.pipeline_mode<synchronous>, transform_indices = @transform_2, window_bounds = array<i64: 1, 192>}, {pipeline_mode = #tpu.pipeline_mode<synchronous>, transform_indices = @transform_3, window_bounds = array<i64: 192, 128>}, {pipeline_mode = #tpu.pipeline_mode<synchronous>, transform_indices = @transform_4, window_bounds = array<i64: 1, 128>}, {transform_indices = @transform_5, window_bounds = array<i64: 8, 128>}]} {
    %c0 = arith.constant 0 : index
    %c0_0 = arith.constant 0 : index
    %0 = vector.load %arg1[%c0, %c0_0] : memref<8x96xbf16, #tpu.memory_space<vmem>>, vector<8x96xbf16>
    %c0_1 = arith.constant 0 : index
    %c0_2 = arith.constant 0 : index
    %1 = vector.load %arg2[%c0_1, %c0_2] : memref<96x192xbf16, #tpu.memory_space<vmem>>, vector<96x192xbf16>
    %cst = arith.constant dense<0.000000e+00> : vector<8x192xf32>
    %2 = tpu.matmul %0, %1, %cst {dimension_numbers = #tpu.dot_dimension_numbers<[1], [0], [0], [1], [0, 0, 1, 1], [], []>} : vector<8x96xbf16>, vector<96x192xbf16>, vector<8x192xf32> -> vector<8x192xf32>
    %c0_3 = arith.constant 0 : index
    %c0_4 = arith.constant 0 : index
    %3 = vector.load %arg3[%c0_3, %c0_4] : memref<1x192xf32, #tpu.memory_space<vmem>>, vector<1x192xf32>
    %4 = vector.broadcast %3 : vector<1x192xf32> to vector<8x192xf32>
    %5 = arith.addf %2, %4 : vector<8x192xf32>
    %cst_5 = arith.constant 0.000000e+00 : f32
    %6 = vector.broadcast %cst_5 : f32 to vector<8x192xf32>
    %7 = arith.maximumf %5, %6 : vector<8x192xf32>
    %8 = arith.truncf %7 : vector<8x192xf32> to vector<8x192xbf16>
    %c0_6 = arith.constant 0 : index
    %c0_7 = arith.constant 0 : index
    %9 = vector.load %arg4[%c0_6, %c0_7] : memref<192x128xbf16, #tpu.memory_space<vmem>>, vector<192x128xbf16>
    %cst_8 = arith.constant dense<0.000000e+00> : vector<8x128xf32>
    %10 = tpu.matmul %8, %9, %cst_8 {dimension_numbers = #tpu.dot_dimension_numbers<[1], [0], [0], [1], [0, 0, 1, 1], [], []>} : vector<8x192xbf16>, vector<192x128xbf16>, vector<8x128xf32> -> vector<8x128xf32>
    %c0_9 = arith.constant 0 : index
    %c0_10 = arith.constant 0 : index
    %11 = vector.load %arg5[%c0_9, %c0_10] : memref<1x128xf32, #tpu.memory_space<vmem>>, vector<1x128xf32>
    %12 = vector.broadcast %11 : vector<1x128xf32> to vector<8x128xf32>
    %13 = arith.addf %10, %12 : vector<8x128xf32>
    %c0_11 = arith.constant 0 : index
    %c0_12 = arith.constant 0 : index
    %14 = vector.load %arg6[%c0_11, %c0_12] : memref<8x128xf32, #tpu.memory_space<vmem>>, vector<8x128xf32>
    tpu.vector_store %arg6[%c0_11, %c0_12], %13 {strides = array<i32>} : memref<8x128xf32, #tpu.memory_space<vmem>>, vector<8x128xf32>,
    return
  }
  func.func @transform_0(%arg0: i32) -> (i32, i32) {
    %c0_i32 = arith.constant 0 : i32
    %c0_i32_0 = arith.constant 0 : i32
    return %arg0, %c0_i32 : i32, i32
  }
  func.func @transform_1(%arg0: i32) -> (i32, i32) {
    %c0_i32 = arith.constant 0 : i32
    %c0_i32_0 = arith.constant 0 : i32
    %c0_i32_1 = arith.constant 0 : i32
    return %c0_i32, %c0_i32_0 : i32, i32
  }
  func.func @transform_2(%arg0: i32) -> (i32, i32) {
    %c0_i32 = arith.constant 0 : i32
    %c0_i32_0 = arith.constant 0 : i32
    %c0_i32_1 = arith.constant 0 : i32
    return %c0_i32, %c0_i32_0 : i32, i32
  }
  func.func @transform_3(%arg0: i32) -> (i32, i32) {
    %c0_i32 = arith.constant 0 : i32
    %c0_i32_0 = arith.constant 0 : i32
    %c0_i32_1 = arith.constant 0 : i32
    return %c0_i32, %c0_i32_0 : i32, i32
  }
  func.func @transform_4(%arg0: i32) -> (i32, i32) {
    %c0_i32 = arith.constant 0 : i32
    %c0_i32_0 = arith.constant 0 : i32
    %c0_i32_1 = arith.constant 0 : i32
    return %c0_i32, %c0_i32_0 : i32, i32
  }
  func.func @transform_5(%arg0: i32) -> (i32, i32) {
    %c0_i32 = arith.constant 0 : i32
    %c0_i32_0 = arith.constant 0 : i32
    return %arg0, %c0_i32 : i32, i32
  }
}

</mosaic_0001>

<bundles_post_ra>
// kernel: mlp_forward.1
= control target key start
LH: loop header
LB: loop body
LE: loop exit
PB: predicated region body
PF: predicated region fallthrough
CT: control target
= control target key end

     0   :  { %v401_v2 = vmov 0   ;;  %s526_s0 = inlined_call_operand.vmem [shape: bf16[8,96], index: 0, kind: input, shape index: {}]   ;;  %s527_s1 = inlined_call_operand.vmem [shape: bf16[96,192], index: 1, kind: input, shape index: {}]   ;;  %s528_s2 = inlined_call_operand.vmem [shape: f32[1,192], index: 2, kind: input, shape index: {}]   ;;  %s529_s3 = inlined_call_operand.vmem [shape: bf16[192,128], index: 3, kind: input, shape index: {}]   ;;  %s530_s4 = inlined_call_operand.vmem [shape: f32[1,128], index: 4, kind: input, shape index: {}]   ;;  %s531_s5 = inlined_call_operand.hbm [shape: f32[8,128], index: 5, kind: output, shape index: {}]  }
   0x1   :  { %v347_v0 = vld [vmem:[%s527_s1 + $0x4] ss:$8 sps:$4 sm:$0xff]   ;;  %v349_v1 = vld [vmem:[%s527_s1] ss:$8 sps:$4 sm:$0xff]   ;;  %143 = vmatprep.mubr.bf16.mxu0 %v401_v2  ;;  %263 = vmatprep.subr.bf16.mxu1 %v401_v2  ;;  %v350_v3 = vld [vmem:[%s527_s1 + $0x14] ss:$8 sps:$4 sm:$0xff]  }
   0x2   :  { %111 = vmatprep.subr.bf16.mxu0 %v347_v0  ;;  %v352_v4 = vld [vmem:[%s527_s1 + $0x10] ss:$8 sps:$4 sm:$0xff]   ;;  %v353_v5 = vld [vmem:[%s527_s1 + $0x24] ss:$8 sps:$4 sm:$0xff]   ;;  %v355_v6 = vld [vmem:[%s527_s1 + $0x20] ss:$8 sps:$4 sm:$0xff]  }
   0x3   :  { %112 = vmatpush1.bf16.msra.mxu0 %v349_v1  ;;  %v356_v7 = vld [vmem:[%s527_s1 + $0x34] ss:$8 sps:$4 sm:$0xff]   ;;  %v365_v8 = vld [vmem:[%s529_s3] sm:$0xff]   ;;  %v358_v9 = vld [vmem:[%s527_s1 + $0x30] ss:$8 sps:$4 sm:$0xff]  }
   0x4   :  { %113 = vmatprep.subr.bf16.mxu0 %v350_v3  ;;  %264 = vmatpush1.bf16.msra.mxu1 %v365_v8  ;;  %v366_v10 = vld [vmem:[%s529_s3 + $0x8] sm:$0xff]   ;;  %v367_v13 = vld [vmem:[%s529_s3 + $0x10] sm:$0xff]   ;;  %v368_v16 = vld [vmem:[%s529_s3 + $0x18] sm:$0xff]  }
   0x5   :  { %v359_v11 = vld [vmem:[%s527_s1 + $0x44] ss:$8 sps:$4 sm:$0xff]   ;;  %265 = vmatprep.subr.bf16.mxu1 %v401_v2  ;;  %v361_v12 = vld [vmem:[%s527_s1 + $0x40] ss:$8 sps:$4 sm:$0xff]   ;;  %v362_v14 = vld [vmem:[%s527_s1 + $0x54] ss:$8 sps:$4 sm:$0xff]  }
   0x6   :  { %v364_v15 = vld [vmem:[%s527_s1 + $0x50] ss:$8 sps:$4 sm:$0xff]  }
   0x7   :  { %114 = vmatpush1.bf16.msra.mxu0 %v352_v4 }
   0x8   :  { %115 = vmatprep.subr.bf16.mxu0 %v353_v5  ;;  %266 = vmatpush1.bf16.msra.mxu1 %v366_v10 }
   0x9   :  { %267 = vmatprep.subr.bf16.mxu1 %v401_v2 }
   0xb   :  { %116 = vmatpush1.bf16.msra.mxu0 %v355_v6 }
   0xc   :  { %117 = vmatprep.subr.bf16.mxu0 %v356_v7  ;;  %268 = vmatpush1.bf16.msra.mxu1 %v367_v13 }
   0xd   :  { %269 = vmatprep.subr.bf16.mxu1 %v401_v2 }
   0xf   :  { %118 = vmatpush1.bf16.msra.mxu0 %v358_v9 }
  0x10   :  { %119 = vmatprep.subr.bf16.mxu0 %v359_v11 }
  0x13   :  { %120 = vmatpush1.bf16.msra.mxu0 %v361_v12 }
  0x14   :  { %121 = vmatprep.subr.bf16.mxu0 %v362_v14 }
  0x15   :  { %10 = vsyncpa [#allocation3], 0  ;;  %v22_v17 = vld [vmem:[%s526_s0] sm:$0xf]  ;;  %vm107_vm0 = vcmask 785408   ;;  %270 = vmatpush1.bf16.msra.mxu1 %v368_v16  ;;  %v370_v19 = vld [vmem:[%s529_s3 + $0x28] sm:$0xff]   ;;  %v37_v26 = vlaneseq }
  0x16   :  { %v369_v18 = vld [vmem:[%s529_s3 + $0x20] sm:$0xff]   ;;  %271 = vmatprep.subr.bf16.mxu1 %v401_v2  ;;  %v371_v20 = vld [vmem:[%s529_s3 + $0x30] sm:$0xff]   ;;  %v372_v21 = vld [vmem:[%s529_s3 + $0x38] sm:$0xff]   ;;  %vm259_vm1 = vcmask 523264  }
  0x17   :  { %122 = vmatpush1.bf16.msra.mxu0 %v364_v15  ;;  %v373_v22 = vld [vmem:[%s529_s3 + $0x40] sm:$0xff]   ;;  %v374_v23 = vld [vmem:[%s529_s3 + $0x48] sm:$0xff]   ;;  %v375_v24 = vld [vmem:[%s529_s3 + $0x50] sm:$0xff]   ;;  %v38_v27 = vshrl.u32 %v37_v26, 7 }
  0x18   :  { %v376_v25 = vld [vmem:[%s529_s3 + $0x58] sm:$0xff]   ;;  %v35_v29 = vld [vmem:[%s528_s2] sm:$0x3]  ;;  %s402_s2 = smov [#allocation2]  }
  0x19   :  { %272 = vmatpush1.bf16.msra.mxu1 %v369_v18  ;;  %v39_v28 = vsub.s32 0, %v38_v27  ;;  %v43_v30 = vsub.s32 1, %v38_v27  ;;  %v331_v43 = vld [vmem:[%s530_s4] ss:$0 sm:$0xff]  ;;  %s310_s19 = sshll.u32 %s402_s2, 4  ;;  %s311_s19 = int_to_ptr.vmem [resolvable:$true] %s310_s19 }
  0x1a   :  { %330 = vmatmul.mubr.msk.bf16.vlgmr.msra.gmra.mrb[0].mxu0 %vm107_vm0, %v22_v17  ;;  %273 = vmatprep.subr.bf16.mxu1 %v401_v2  ;;  %s377_s20 = scalar_lea.vmem %s311_s19, 128  ;;  %p382_p1 = scmp.lt.s32.totalorder %s311_s19, %s311_s19 }
  0x1b   :  { %v40_v31 = vrot.slane %v35_v29, %v39_v28  ;;  %v44_v32 = vrot.slane %v35_v29, %v43_v30  ;;  %p378_p0 = scmp.ne.s32.totalorder %s311_s19, %s377_s20  ;;  %p383_p2 = scmp.lt.s32.totalorder %s377_s20, %s377_s20 }
  0x1d   :  { %274 = vmatpush1.bf16.msra.mxu1 %v370_v19  ;;  %p384_p3 = por %p383_p2, %p382_p1 }
  0x1e   :  { %275 = vmatprep.subr.bf16.mxu1 %v401_v2 }
  0x1f   :  { %p385_p4 = pnand %p384_p3, %p378_p0 }
  0x21   :  { %276 = vmatpush1.bf16.msra.mxu1 %v371_v20 }
  0x22   :  { %277 = vmatprep.subr.bf16.mxu1 %v401_v2 }
  0x25   :  { %278 = vmatpush1.bf16.msra.mxu1 %v372_v21 }
  0x26   :  { %279 = vmatprep.subr.bf16.mxu1 %v401_v2 }
  0x29   :  { %280 = vmatpush1.bf16.msra.mxu1 %v373_v22 }
  0x2a   :  { %281 = vmatprep.subr.bf16.mxu1 %v401_v2 }
  0x2d   :  { %282 = vmatpush1.bf16.msra.mxu1 %v374_v23 }
  0x2e   :  { %283 = vmatprep.subr.bf16.mxu1 %v401_v2 }
  0x31   :  { %284 = vmatpush1.bf16.msra.mxu1 %v375_v24 }
  0x32   :  { %285 = vmatprep.subr.bf16.mxu1 %v401_v2 }
  0x35   :  { %286 = vmatpush1.bf16.msra.mxu1 %v376_v25 }
  0xed   :  { %v145_v33 = vpop.f32.mrb[0].mxu0 }
  0xee   :  { %v146_v34 = vadd.f32 %v145_v33, %v40_v31  ;;  %v147_v35 = vpop.f32.mrb[1].mxu0 }
  0xef   :  { %v148_v36 = vadd.f32 %v147_v35, %v44_v32  ;;  %v149_v37 = vpop.f32.mrb[2].mxu0 }
  0xf0   :  { %v152_v38 = vmax.f32 %v146_v34, 0.0  ;;  %v150_v39 = vpop.f32.mrb[3].mxu0 }
  0xf1   :  { %v153_v40 = vmax.f32 %v148_v36, 0.0 }
  0xf2   :  { %v154_v42 = vpack.c.bf16 %v152_v38, %v152_v38 }
  0xf3   :  { %v155_v41 = vpack.c.bf16 %v153_v40, %v153_v40 }
  0xf5   :  { %344 = vmatprep.mubr.msk.bf16.mxu1 %vm259_vm1, %v155_v41 }
  0xf6   :  { %296 = vmatmul.mubr.bf16.vlgmr.msra.gmra.mrb[0].mxu1 %v154_v42 }
 0x1c9   :  { %v297_v44 = vpop.f32.mrb[0].mxu1 }
 0x1ca   :  { %v298_v45 = vadd.f32 %v331_v43, %v297_v44  ;;  %v299_v46 = vpop.f32.mrb[1].mxu1 }
 0x1cb   :  { %v300_v47 = vpop.f32.mrb[2].mxu1 }
 0x1cc   :  { %303 = vst [vmem:[#allocation2] sm:$0xff] %v298_v45  ;;  %v301_v48 = vpop.f32.mrb[3].mxu1 }
 0x1cd   :  { %388 = shalt.err (!%p385_p4)
}
 0x1ce   :  { %s389_s4 = scalar_lea.hbm %s531_s5, 128 }
 0x1cf   :  { %p390_p5 = scmp.ne.s32.totalorder %s531_s5, %s389_s4  ;;  %p393_p6 = scmp.lt.u32.totalorder %s389_s4, %s531_s5 }
 0x1d1   :  { %p395_p7 = pnand %p393_p6, %p390_p5 }
 0x1d3   :  { %398 = shalt.err (!%p395_p7)
}
 0x1d4   :  { %313 = dma.vmem_to_hbm [thread:$0]  %s311_s19, 128, %s531_s5, [#allocation3]  }
 0x1d5   :  { %399 = dma.done.wait [#allocation3], 128  }
 0x1d6   :  { %400 = vsyncadd [#allocation3], 4294967168 }
 0x1d7   :  { %317 = vsyncpa [#allocation3], 1 }

</bundles_post_ra>
